<compile_context>
chip_gen: v6e
topology: v6e:2x2x1
jax: 0.10.0
libtpu: 0.0.40
codegen_flags: <defaults>
</compile_context>

<pallas_src>
import jax
import jax.numpy as jnp
from jax.experimental import pallas as pl
from jax.experimental.pallas import tpu as pltpu


def mlp_kernel(x_ref, w1_ref, b1_ref, w2_ref, b2_ref, o_ref):
    # Two MXU matmuls (bf16 in, f32 accumulate) + f32 VPU epilogue, one VMEM tile.
    x = x_ref[...].astype(jnp.bfloat16)   # (TM, 20)  f32 in HBM -> bf16 in-kernel
    w1 = w1_ref[...]                      # (20, 256) bf16, VMEM-resident
    b1 = b1_ref[...]                      # (1, 256)  f32
    w2 = w2_ref[...]                      # (256, 10) bf16, VMEM-resident
    b2 = b2_ref[...]                      # (1, 10)   f32

    h = jnp.dot(x, w1, preferred_element_type=jnp.float32) + b1
    h = jnp.maximum(h, 0.0)               # ReLU in f32
    h = h.astype(jnp.bfloat16)            # bf16 MXU input for the second matmul
    out = jnp.dot(h, w2, preferred_element_type=jnp.float32) + b2
    o_ref[...] = out                      # narrow (10-lane) store; vst slack is huge


def _round_up(n, m):
    return ((n + m - 1) // m) * m


def _choose_tm(B):
    # Tiny batches: one tile covering the whole array (block dim == full dim is legal).
    if B <= 16:
        return B
    # Real batches: big tiles for DMA efficiency, capped at 512 (per-step overhead
    # ~0.35us is already negligible) and at ~B/2 so the batch grid has >= 2 steps
    # and both v7x TensorCores are fed.
    half = _round_up((B + 1) // 2, 16)
    return min(512, half)


def mlp_forward(x, w1, b1, w2, b2):
    B, K = x.shape
    H = w1.shape[1]
    N = w2.shape[1]

    tm = _choose_tm(B)
    # Ragged last tile is fine: OOB input rows are unused garbage, OOB output
    # rows are dropped by Pallas, so no jnp.pad copy and no wrapper slice.
    grid = (pl.cdiv(B, tm),)

    # Weight-side casts are tiny one-off ops (~15 KB); x is NOT cast in the wrapper.
    w1_bf = w1.astype(jnp.bfloat16)
    w2_bf = w2.astype(jnp.bfloat16)
    b1_f32 = b1.astype(jnp.float32)
    b2_f32 = b2.astype(jnp.float32)

    vmem = pltpu.MemorySpace.VMEM

    out = pl.pallas_call(
        mlp_kernel,
        out_shape=jax.ShapeDtypeStruct((B, N), jnp.float32),
        grid_spec=pltpu.PrefetchScalarGridSpec(
            num_scalar_prefetch=0,
            grid=grid,
            in_specs=[
                # x tiles stream over the batch grid (double-buffered by default).
                pl.BlockSpec((tm, K), lambda i: (i, 0), memory_space=vmem),
                # Weights / biases: constant index_map => fetched once, VMEM-resident.
                pl.BlockSpec((K, H), lambda i: (0, 0), memory_space=vmem),
                pl.BlockSpec((1, H), lambda i: (0, 0), memory_space=vmem),
                pl.BlockSpec((H, N), lambda i: (0, 0), memory_space=vmem),
                pl.BlockSpec((1, N), lambda i: (0, 0), memory_space=vmem),
            ],
            out_specs=pl.BlockSpec((tm, N), lambda i: (i, 0), memory_space=vmem),
        ),
        compiler_params=pltpu.CompilerParams(
            dimension_semantics=("parallel",),     # v7x: shard batch tiles across TCs
            vmem_limit_bytes=32 * 1024 * 1024,     # explicit, portable to v7x's 64 MiB
        ),
    )(x, w1_bf, b1_f32, w2_bf, b2_f32)

    return out


mlp_forward = jax.jit(mlp_forward)


def init_params(key, in_dim=20, hidden_dim=256, out_dim=10):
    # Deterministic init mimicking nn.Linear's uniform(-1/sqrt(fan_in), 1/sqrt(fan_in)).
    k1, k2, k3, k4 = jax.random.split(key, 4)
    bound1 = 1.0 / jnp.sqrt(in_dim)
    bound2 = 1.0 / jnp.sqrt(hidden_dim)
    w1 = jax.random.uniform(k1, (in_dim, hidden_dim), jnp.float32, -bound1, bound1)
    b1 = jax.random.uniform(k2, (1, hidden_dim), jnp.float32, -bound1, bound1)
    w2 = jax.random.uniform(k3, (hidden_dim, out_dim), jnp.float32, -bound2, bound2)
    b2 = jax.random.uniform(k4, (1, out_dim), jnp.float32, -bound2, bound2)
    return w1, b1, w2, b2


if __name__ == "__main__":
    key = jax.random.PRNGKey(0)
    kx, kp = jax.random.split(key)

    # Matches X = torch.rand(2, 20)
    x = jax.random.uniform(kx, (2, 20), jnp.float32)
    w1, b1, w2, b2 = init_params(kp)

    out = mlp_forward(x, w1, b1, w2, b2)
    out = jax.block_until_ready(out)
    assert out.shape == (2, 10)

    # Reference 1: same bf16-input / f32-accumulate math path (tight tolerance).
    xb, w1b, w2b = (x.astype(jnp.bfloat16), w1.astype(jnp.bfloat16), w2.astype(jnp.bfloat16))
    h_ref = jnp.maximum(jnp.dot(xb, w1b, preferred_element_type=jnp.float32) + b1, 0.0)
    ref_bf16 = jnp.dot(h_ref.astype(jnp.bfloat16), w2b,
                       preferred_element_type=jnp.float32) + b2
    assert jnp.allclose(out, ref_bf16, atol=1e-3, rtol=1e-3)

    # Reference 2: full f32 math (loose tolerance accounts for bf16 MXU inputs).
    ref_f32 = jnp.maximum(x @ w1 + b1, 0.0) @ w2 + b2
    assert jnp.allclose(out, ref_f32, atol=3e-2, rtol=3e-2)

    # A larger, non-tile-aligned batch to exercise the multi-step (ragged) grid path.
    xL = jax.random.uniform(jax.random.PRNGKey(1), (300, 20), jnp.float32)
    outL = jax.block_until_ready(mlp_forward(xL, w1, b1, w2, b2))
    refL = jnp.maximum(xL @ w1 + b1, 0.0) @ w2 + b2
    assert outL.shape == (300, 10)
    assert jnp.allclose(outL, refL, atol=3e-2, rtol=3e-2)

    print("KERNEL_OK")
</pallas_src>

<mosaic_0001>
module attributes {stable_mosaic.version = 11 : i64} {
  func.func @mlp_kernel(%arg0: i32, %arg1: memref<2x20xf32, #tpu.memory_space<vmem>>, %arg2: memref<20x256xbf16, #tpu.memory_space<vmem>>, %arg3: memref<1x256xf32, #tpu.memory_space<vmem>>, %arg4: memref<256x10xbf16, #tpu.memory_space<vmem>>, %arg5: memref<1x10xf32, #tpu.memory_space<vmem>>, %arg6: memref<2x10xf32, #tpu.memory_space<vmem>>) attributes {dimension_semantics = [#tpu.dimension_semantics<parallel>], iteration_bounds = array<i64: 1>, scalar_prefetch = 0 : i64, scratch_operands = 0 : i64, tpu.core_type = #tpu.core_type<tc>, window_params = [{transform_indices = @transform_0, window_bounds = array<i64: 2, 20>}, {pipeline_mode = #tpu.pipeline_mode<synchronous>, transform_indices = @transform_1, window_bounds = array<i64: 20, 256>}, {pipeline_mode = #tpu.pipeline_mode<synchronous>, transform_indices = @transform_2, window_bounds = array<i64: 1, 256>}, {pipeline_mode = #tpu.pipeline_mode<synchronous>, transform_indices = @transform_3, window_bounds = array<i64: 256, 10>}, {pipeline_mode = #tpu.pipeline_mode<synchronous>, transform_indices = @transform_4, window_bounds = array<i64: 1, 10>}, {transform_indices = @transform_5, window_bounds = array<i64: 2, 10>}]} {
    %c0 = arith.constant 0 : index
    %c0_0 = arith.constant 0 : index
    %0 = vector.load %arg1[%c0, %c0_0] : memref<2x20xf32, #tpu.memory_space<vmem>>, vector<2x20xf32>
    %1 = arith.truncf %0 : vector<2x20xf32> to vector<2x20xbf16>
    %c0_1 = arith.constant 0 : index
    %c0_2 = arith.constant 0 : index
    %2 = vector.load %arg2[%c0_1, %c0_2] : memref<20x256xbf16, #tpu.memory_space<vmem>>, vector<20x256xbf16>
    %c0_3 = arith.constant 0 : index
    %c0_4 = arith.constant 0 : index
    %3 = vector.load %arg3[%c0_3, %c0_4] : memref<1x256xf32, #tpu.memory_space<vmem>>, vector<1x256xf32>
    %c0_5 = arith.constant 0 : index
    %c0_6 = arith.constant 0 : index
    %4 = vector.load %arg4[%c0_5, %c0_6] : memref<256x10xbf16, #tpu.memory_space<vmem>>, vector<256x10xbf16>
    %c0_7 = arith.constant 0 : index
    %c0_8 = arith.constant 0 : index
    %5 = vector.load %arg5[%c0_7, %c0_8] : memref<1x10xf32, #tpu.memory_space<vmem>>, vector<1x10xf32>
    %cst = arith.constant dense<0.000000e+00> : vector<2x256xf32>
    %6 = tpu.matmul %1, %2, %cst {dimension_numbers = #tpu.dot_dimension_numbers<[1], [0], [0], [1], [0, 0, 1, 1], [], []>} : vector<2x20xbf16>, vector<20x256xbf16>, vector<2x256xf32> -> vector<2x256xf32>
    %7 = vector.broadcast %3 : vector<1x256xf32> to vector<2x256xf32>
    %8 = arith.addf %6, %7 : vector<2x256xf32>
    %cst_9 = arith.constant 0.000000e+00 : f32
    %9 = vector.broadcast %cst_9 : f32 to vector<2x256xf32>
    %10 = arith.maximumf %8, %9 : vector<2x256xf32>
    %11 = arith.truncf %10 : vector<2x256xf32> to vector<2x256xbf16>
    %cst_10 = arith.constant dense<0.000000e+00> : vector<2x10xf32>
    %12 = tpu.matmul %11, %4, %cst_10 {dimension_numbers = #tpu.dot_dimension_numbers<[1], [0], [0], [1], [0, 0, 1, 1], [], []>} : vector<2x256xbf16>, vector<256x10xbf16>, vector<2x10xf32> -> vector<2x10xf32>
    %13 = vector.broadcast %5 : vector<1x10xf32> to vector<2x10xf32>
    %14 = arith.addf %12, %13 : vector<2x10xf32>
    %c0_11 = arith.constant 0 : index
    %c0_12 = arith.constant 0 : index
    %15 = vector.load %arg6[%c0_11, %c0_12] : memref<2x10xf32, #tpu.memory_space<vmem>>, vector<2x10xf32>
    tpu.vector_store %arg6[%c0_11, %c0_12], %14 {strides = array<i32>} : memref<2x10xf32, #tpu.memory_space<vmem>>, vector<2x10xf32>,
    return
  }
  func.func @transform_0(%arg0: i32) -> (i32, i32) {
    %c0_i32 = arith.constant 0 : i32
    %c0_i32_0 = arith.constant 0 : i32
    return %arg0, %c0_i32 : i32, i32
  }
  func.func @transform_1(%arg0: i32) -> (i32, i32) {
    %c0_i32 = arith.constant 0 : i32
    %c0_i32_0 = arith.constant 0 : i32
    %c0_i32_1 = arith.constant 0 : i32
    return %c0_i32, %c0_i32_0 : i32, i32
  }
  func.func @transform_2(%arg0: i32) -> (i32, i32) {
    %c0_i32 = arith.constant 0 : i32
    %c0_i32_0 = arith.constant 0 : i32
    %c0_i32_1 = arith.constant 0 : i32
    return %c0_i32, %c0_i32_0 : i32, i32
  }
  func.func @transform_3(%arg0: i32) -> (i32, i32) {
    %c0_i32 = arith.constant 0 : i32
    %c0_i32_0 = arith.constant 0 : i32
    %c0_i32_1 = arith.constant 0 : i32
    return %c0_i32, %c0_i32_0 : i32, i32
  }
  func.func @transform_4(%arg0: i32) -> (i32, i32) {
    %c0_i32 = arith.constant 0 : i32
    %c0_i32_0 = arith.constant 0 : i32
    %c0_i32_1 = arith.constant 0 : i32
    return %c0_i32, %c0_i32_0 : i32, i32
  }
  func.func @transform_5(%arg0: i32) -> (i32, i32) {
    %c0_i32 = arith.constant 0 : i32
    %c0_i32_0 = arith.constant 0 : i32
    return %arg0, %c0_i32 : i32, i32
  }
}

</mosaic_0001>

<bundles_post_ra>
// kernel: mlp_forward.1
= control target key start
LH: loop header
LB: loop body
LE: loop exit
PB: predicated region body
PF: predicated region fallthrough
CT: control target
= control target key end

     0   :  { %vm91_vm0 = vcmask 1041408   ;;  %v391_v4 = vmov 0   ;;  %vm87_vm1 = vcmask 162816   ;;  %s492_s0 = inlined_call_operand.vmem [shape: f32[2,20], index: 0, kind: input, shape index: {}]   ;;  %s493_s1 = inlined_call_operand.vmem [shape: bf16[20,256], index: 1, kind: input, shape index: {}]   ;;  %s494_s2 = inlined_call_operand.vmem [shape: f32[1,256], index: 2, kind: input, shape index: {}]   ;;  %s495_s3 = inlined_call_operand.vmem [shape: bf16[256,10], index: 3, kind: input, shape index: {}]   ;;  %s496_s4 = inlined_call_operand.vmem [shape: f32[1,10], index: 4, kind: input, shape index: {}]   ;;  %s497_s5 = inlined_call_operand.hbm [shape: f32[2,10], index: 5, kind: output, shape index: {}]  }
   0x1   :  { %v26_v0 = vld [vmem:[%s493_s1 + $0x10] sm:$0x33]  ;;  %v350_v3 = vld [vmem:[%s493_s1 + $0x4] ss:$8 sps:$4 sm:$0xff]   ;;  %130 = vmatprep.mubr.bf16.mxu0 %v391_v4  ;;  %v352_v5 = vld [vmem:[%s493_s1] ss:$8 sps:$4 sm:$0xff]  }
   0x2   :  { %v304_v1 = vcombine.high %v26_v0, %v26_v0  ;;  %v303_v2 = vcombine.low %v26_v0, %v26_v0  ;;  %v22_v6 = vld [vmem:[%s492_s0] sm:$0x3]  ;;  %v353_v7 = vld [vmem:[%s495_s3 + $0x78] sm:$0xff]   ;;  %v355_v10 = vld [vmem:[%s495_s3 + $0x70] sm:$0xff]  }
   0x3   :  { %v354_v9 = vld [vmem:[%s495_s3 + $0x38] sm:$0xff]   ;;  %324 = vmatprep.subr.bf16.mxu1 %v353_v7  ;;  %v356_v11 = vld [vmem:[%s495_s3 + $0x30] sm:$0xff]   ;;  %v357_v12 = vld [vmem:[%s495_s3 + $0x68] sm:$0xff]   ;;  %v23_v13 = vpack.c.bf16 %v22_v6, %v22_v6 }
   0x4   :  { %305 = vmatprep.subr.msk.bf16.mxu0 %vm91_vm0, %v304_v1  ;;  %v93_v8 = vsel %vm91_vm0, %v303_v2, 0  ;;  %325 = vmatpush3.bf16.msra.mxu1 %v354_v9  ;;  %v358_v14 = vld [vmem:[%s495_s3 + $0x28] sm:$0xff]   ;;  %v359_v15 = vld [vmem:[%s495_s3 + $0x60] sm:$0xff]   ;;  %v361_v17 = vld [vmem:[%s495_s3 + $0x58] sm:$0xff]  }
   0x5   :  { %111 = vmatpush1.bf16.msra.mxu0 %v93_v8  ;;  %326 = vmatprep.subr.bf16.mxu1 %v355_v10  ;;  %v360_v16 = vld [vmem:[%s495_s3 + $0x20] sm:$0xff]   ;;  %v362_v18 = vld [vmem:[%s495_s3 + $0x18] sm:$0xff]  }
   0x6   :  { %112 = vmatprep.subr.bf16.mxu0 %v350_v3 }
   0x8   :  { %327 = vmatpush3.bf16.msra.mxu1 %v356_v11 }
   0x9   :  { %113 = vmatpush1.bf16.msra.mxu0 %v352_v5  ;;  %328 = vmatprep.subr.bf16.mxu1 %v357_v12 }
   0xc   :  { %306 = vmatmul.mubr.msk.bf16.vlgmr.msra.gmra.mxu0 %vm87_vm1, %v23_v13  ;;  %329 = vmatpush3.bf16.msra.mxu1 %v358_v14 }
   0xd   :  { %330 = vmatprep.subr.bf16.mxu1 %v359_v15 }
  0x10   :  { %331 = vmatpush3.bf16.msra.mxu1 %v360_v16 }
  0x11   :  { %10 = vsyncpa [#allocation3], 0  ;;  %332 = vmatprep.subr.bf16.mxu1 %v361_v17  ;;  %v363_v19 = vld [vmem:[%s495_s3 + $0x50] sm:$0xff]   ;;  %v365_v21 = vld [vmem:[%s495_s3 + $0x48] sm:$0xff]   ;;  %v62_v25 = vlaneseq  ;;  %vm285_vm2 = vcmask 74752  }
  0x12   :  { %v364_v20 = vld [vmem:[%s495_s3 + $0x10] sm:$0xff]   ;;  %v366_v22 = vld [vmem:[%s495_s3 + $0x8] sm:$0xff]   ;;  %v367_v23 = vld [vmem:[%s495_s3 + $0x40] sm:$0xff]  }
  0x13   :  { %v368_v24 = vld [vmem:[%s495_s3] sm:$0xff]   ;;  %v63_v26 = vshrl.u32 %v62_v25, 7 }
  0x14   :  { %333 = vmatpush3.bf16.msra.mxu1 %v362_v18  ;;  %v27_v28 = vld [vmem:[%s494_s2] sm:$0x3]  ;;  %s392_s2 = smov [#allocation2]  }
  0x15   :  { %334 = vmatprep.subr.bf16.mxu1 %v363_v19  ;;  %v64_v27 = vsub.s32 0, %v63_v26  ;;  %v68_v29 = vsub.s32 1, %v63_v26  ;;  %v307_v43 = vld [vmem:[%s496_s4] ss:$0 sm:$0xff]  ;;  %s293_s7 = sshll.u32 %s392_s2, 4  ;;  %s294_s7 = int_to_ptr.vmem [resolvable:$true] %s293_s7 }
  0x16   :  { %s369_s8 = scalar_lea.vmem %s294_s7, 32  ;;  %p374_p1 = scmp.lt.s32.totalorder %s294_s7, %s294_s7 }
  0x17   :  { %v65_v30 = vrot.slane %v27_v28, %v64_v27  ;;  %v69_v31 = vrot.slane %v27_v28, %v68_v29  ;;  %p370_p0 = scmp.ne.s32.totalorder %s294_s7, %s369_s8  ;;  %p375_p2 = scmp.lt.s32.totalorder %s369_s8, %s369_s8 }
  0x18   :  { %335 = vmatpush3.bf16.msra.mxu1 %v364_v20 }
  0x19   :  { %336 = vmatprep.subr.bf16.mxu1 %v365_v21  ;;  %p376_p3 = por %p375_p2, %p374_p1 }
  0x1b   :  { %p377_p4 = pnand %p376_p3, %p370_p0 }
  0x1c   :  { %337 = vmatpush3.bf16.msra.mxu1 %v366_v22 }
  0x1d   :  { %338 = vmatprep.subr.bf16.mxu1 %v367_v23 }
  0x20   :  { %339 = vmatpush3.bf16.msra.mxu1 %v368_v24 }
  0xcc   :  { %v132_v32 = vpop.f32.mrf.mxu0 }
  0xcd   :  { %v133_v33 = vadd.f32 %v132_v32, %v65_v30 }
  0xce   :  { %v134_v34 = vpop.f32.mrf.mxu0 }
  0xcf   :  { %v135_v35 = vadd.f32 %v134_v34, %v69_v31  ;;  %v139_v36 = vmax.f32 %v133_v33, 0.0 }
  0xd0   :  { %v136_v37 = vpop.f32.mrf.mxu0 }
  0xd1   :  { %v140_v38 = vmax.f32 %v135_v35, 0.0  ;;  %v141_v41 = vpack.c.bf16 %v139_v36, %v139_v36 }
  0xd2   :  { %v137_v39 = vpop.f32.mrf.mxu0 }
  0xd3   :  { %v142_v40 = vpack.c.bf16 %v140_v38, %v140_v38 }
  0xd5   :  { %277 = vmatprep.mubr.bf16.mxu1 %v142_v40 }
  0xd6   :  { %278 = vmatmul.mubr.bf16.vlgmr.msra.gmra.mxu1 %v141_v41 }
 0x196   :  { %v340_v42 = vpop.f32.mrf.mxu1 }
 0x198   :  { %v341_v44 = vpop.f32.mrf.mxu1 }
 0x199   :  { %v342_v45 = vadd.f32 %v341_v44, %v340_v42 }
 0x19a   :  { %v343_v46 = vpop.f32.mrf.mxu1 }
 0x19b   :  { %v280_v47 = vadd.f32 %v342_v45, %v307_v43 }
 0x19c   :  { %v344_v48 = vpop.f32.mrf.mxu1 }
 0x19d   :  { %286 = vst.msk [vmem:[#allocation2] sm:$0x3] %vm285_vm2, %v280_v47 }
 0x19e   :  { %380 = shalt.err (!%p377_p4)
}
 0x19f   :  { %296 = dma.vmem_to_hbm [thread:$0]  %s294_s7, 32, %s497_s5, [#allocation3]  }
 0x1a0   :  { %389 = dma.done.wait [#allocation3], 32  }
 0x1a1   :  { %390 = vsyncadd [#allocation3], 4294967264 }
 0x1a2   :  { %300 = vsyncpa [#allocation3], 1 }

</bundles_post_ra>
